<compile_context>
chip_gen: v6e
topology: v6e:2x2x1
jax: 0.10.0
libtpu: 0.0.40
codegen_flags: <defaults>
</compile_context>

<pallas_src>
import functools
import math

import jax
import jax.numpy as jnp
import numpy as np
from jax import lax
from jax.experimental import pallas as pl
from jax.experimental.pallas import tpu as pltpu


# ---------------------------------------------------------------------------
# Tile selection helpers
# ---------------------------------------------------------------------------

_M_TILES = (256, 128, 64, 32, 16, 8)   # sublane-dim tiles (multiples of 8)
_N_TILES = (256, 512, 128)             # lane-dim tiles; prefer 256 (v6e MXU width)
_Q_TILES = (256, 128, 64, 32, 16, 8)   # query-row tiles (capped to bound spills)
_K_TILES = (512, 256, 128)             # key/value-row tiles for the flash Sk axis

# Keep a full (K, N) weight VMEM-resident below this size (double-buffered by
# the pipeline; comfortably inside even v7x's 64 MiB budget with bf16).
_RESIDENT_W_BYTES = 4 * 1024 * 1024


def _pick_tile(dim, candidates):
    """Largest candidate tile that evenly divides `dim`, else the full dim.

    Either way the (8, 128) block-shape constraint is satisfied: candidates
    are multiples of 8/128 and the fallback equals the full array dim.
    """
    for c in candidates:
        if c <= dim and dim % c == 0:
            return c
    return dim


# ---------------------------------------------------------------------------
# Dense layer:  y = x @ W + b   (output dtype = weight/compute dtype)
# ---------------------------------------------------------------------------

def _linear_kernel(x_ref, w_ref, b_ref, o_ref):
    # Cast x to the weight dtype right at the load (bf16 MXU path); accumulate
    # in f32 via preferred_element_type; bias add stays f32.
    x = x_ref[...].astype(w_ref.dtype)
    acc = jnp.dot(x, w_ref[...], preferred_element_type=jnp.float32)
    o_ref[...] = (acc + b_ref[...]).astype(o_ref.dtype)


def linear(x2d, w, b):
    M, K = x2d.shape
    N = w.shape[1]
    b2 = b.reshape(1, N).astype(jnp.float32)
    tm = _pick_tile(M, _M_TILES)
    out_dtype = w.dtype
    cost = pl.CostEstimate(
        flops=2 * M * K * N, transcendentals=0,
        bytes_accessed=(x2d.dtype.itemsize * M * K + w.dtype.itemsize * K * N
                        + 4 * N + out_dtype.itemsize * M * N))

    if K * N * w.dtype.itemsize <= _RESIDENT_W_BYTES:
        # Weight stays VMEM resident (constant block index -> DMA'd once from
        # HBM); only M is tiled.  This is the HBM-optimal shape for v5e.
        grid = (M // tm,)
        in_specs = [pl.BlockSpec((tm, K), lambda i: (i, 0)),
                    pl.BlockSpec((K, N), lambda i: (0, 0)),
                    pl.BlockSpec((1, N), lambda i: (0, 0))]
        out_specs = pl.BlockSpec((tm, N), lambda i: (i, 0))
        dims = ("parallel",)
    else:
        tn = _pick_tile(N, _N_TILES)
        grid = (M // tm, N // tn)
        in_specs = [pl.BlockSpec((tm, K), lambda i, j: (i, 0)),
                    pl.BlockSpec((K, tn), lambda i, j: (0, j)),
                    pl.BlockSpec((1, tn), lambda i, j: (0, j))]
        out_specs = pl.BlockSpec((tm, tn), lambda i, j: (i, j))
        dims = ("parallel", "parallel")

    return pl.pallas_call(
        _linear_kernel,
        out_shape=jax.ShapeDtypeStruct((M, N), out_dtype),
        grid_spec=pltpu.PrefetchScalarGridSpec(
            num_scalar_prefetch=0, grid=grid,
            in_specs=in_specs, out_specs=out_specs),
        compiler_params=pltpu.CompilerParams(dimension_semantics=dims),
        cost_estimate=cost,
    )(x2d, w, b2)


# ---------------------------------------------------------------------------
# Fused Q/K/V projection (self-attention): x read once vs. resident (D, 3D) W
# ---------------------------------------------------------------------------

def _qkv_proj_kernel(x_ref, w_ref, b_ref, q_ref, k_ref, v_ref):
    x = x_ref[...].astype(w_ref.dtype)
    y = jnp.dot(x, w_ref[...], preferred_element_type=jnp.float32) + b_ref[...]
    D = q_ref.shape[-1]
    q_ref[...] = y[:, :D].astype(q_ref.dtype)
    k_ref[...] = y[:, D:2 * D].astype(k_ref.dtype)
    v_ref[...] = y[:, 2 * D:].astype(v_ref.dtype)


def fused_qkv_projection(x2d, w_qkv, b_qkv):
    M, D = x2d.shape
    assert w_qkv.shape == (D, 3 * D)
    tm = _pick_tile(M, _M_TILES)
    out_dtype = w_qkv.dtype
    cost = pl.CostEstimate(
        flops=2 * M * D * 3 * D, transcendentals=0,
        bytes_accessed=(x2d.dtype.itemsize * M * D
                        + w_qkv.dtype.itemsize * 3 * D * D
                        + 4 * 3 * D + out_dtype.itemsize * 3 * M * D))
    return pl.pallas_call(
        _qkv_proj_kernel,
        out_shape=tuple(jax.ShapeDtypeStruct((M, D), out_dtype)
                        for _ in range(3)),
        grid_spec=pltpu.PrefetchScalarGridSpec(
            num_scalar_prefetch=0, grid=(M // tm,),
            in_specs=[pl.BlockSpec((tm, D), lambda i: (i, 0)),
                      pl.BlockSpec((D, 3 * D), lambda i: (0, 0)),
                      pl.BlockSpec((1, 3 * D), lambda i: (0, 0))],
            out_specs=tuple(pl.BlockSpec((tm, D), lambda i: (i, 0))
                            for _ in range(3))),
        compiler_params=pltpu.CompilerParams(dimension_semantics=("parallel",)),
        cost_estimate=cost,
    )(x2d, w_qkv, b_qkv.reshape(1, 3 * D).astype(jnp.float32))


# ---------------------------------------------------------------------------
# Flash attention (online softmax over Sk) with fused output projection
# ---------------------------------------------------------------------------

def _flash_mha_kernel(*refs, h, has_mask):
    if has_mask:
        (q_ref, k_ref, v_ref, wo_ref, bo_ref, m_ref, o_ref,
         m_sc, l_sc, acc_sc) = refs
    else:
        (q_ref, k_ref, v_ref, wo_ref, bo_ref, o_ref,
         m_sc, l_sc, acc_sc) = refs

    D = q_ref.shape[-1]
    dk = D // h
    kv = pl.program_id(2)

    @pl.when(kv == 0)
    def _():
        m_sc[...] = jnp.full(m_sc.shape, -jnp.inf, m_sc.dtype)
        l_sc[...] = jnp.zeros(l_sc.shape, l_sc.dtype)
        acc_sc[...] = jnp.zeros(acc_sc.shape, acc_sc.dtype)

    if has_mask:
        # Additive f32 bias, built once per (q-block, kv-block) and shared by
        # all heads (select -> add; no per-head jnp.where on the scores).
        bias = jnp.where(m_ref[...] == 0, jnp.float32(-1e9), jnp.float32(0.0))

    # Static per-head loop over dk-wide slices of the refs: only one head's
    # Q/K/V slab is live at a time; scores stay (tq, tsk) f32; accumulation
    # goes straight into the (tq, D) VMEM scratch (no concat, no big slabs).
    # NOTE: for best MXU/relayout behavior pick h so dk is a multiple of 128.
    for i in range(h):
        lo, hi = i * dk, (i + 1) * dk
        qi = q_ref[:, lo:hi]
        ki = k_ref[:, lo:hi]
        # scores = q_i @ k_i^T (1/sqrt(dk) already folded into Wq); contract
        # the last dims so no transpose of k is materialized.
        s = lax.dot_general(qi, ki, (((1,), (1,)), ((), ())),
                            preferred_element_type=jnp.float32)
        if has_mask:
            s = s + bias
        m_prev = m_sc[:, i:i + 1]
        m_new = jnp.maximum(m_prev, jnp.max(s, axis=-1, keepdims=True))
        alpha = jnp.exp(m_prev - m_new)
        p = jnp.exp(s - m_new)
        l_sc[:, i:i + 1] = alpha * l_sc[:, i:i + 1] + jnp.sum(
            p, axis=-1, keepdims=True)
        m_sc[:, i:i + 1] = m_new
        acc_sc[:, lo:hi] = alpha * acc_sc[:, lo:hi] + jnp.dot(
            p.astype(v_ref.dtype), v_ref[:, lo:hi],
            preferred_element_type=jnp.float32)
        # TODO(synk): dropout on the attention probabilities omitted
        # (eval-mode identity, as in model.eval()).

    @pl.when(kv == pl.num_programs(2) - 1)
    def _():
        # Deferred softmax normalization on the (tq, dk) accumulator (not the
        # (tq, Sk) scores); reciprocal runs on the EUP.
        for i in range(h):
            lo, hi = i * dk, (i + 1) * dk
            acc_sc[:, lo:hi] = acc_sc[:, lo:hi] * pl.reciprocal(
                l_sc[:, i:i + 1], approx=True)
        # Fused output projection: o = attn @ Wo + bo, stored lane-dense.
        attn = acc_sc[...].astype(wo_ref.dtype)
        out = jnp.dot(attn, wo_ref[...], preferred_element_type=jnp.float32)
        o_ref[...] = (out + bo_ref[...]).astype(o_ref.dtype)


def flash_mha_with_out_proj(q, k, v, mask, wo, bo, *, h, out_dtype):
    """q: (B, Sq, D); k/v: (B, Sk, D); mask: None | (B,1,Sk) | (B,Sq,Sk).

    Heads stay folded into the last dim end-to-end (split/merge happens on
    VMEM tiles inside the kernel); the output projection is fused into the
    epilogue, so the attention result never round-trips through HBM.
    """
    B, Sq, D = q.shape
    Sk = k.shape[1]
    assert D % h == 0
    tq = _pick_tile(Sq, _Q_TILES)
    tsk = _pick_tile(Sk, _K_TILES)
    has_mask = mask is not None

    in_specs = [
        pl.BlockSpec((None, tq, D), lambda b, qi, kv: (b, qi, 0)),
        pl.BlockSpec((None, tsk, D), lambda b, qi, kv: (b, kv, 0)),
        pl.BlockSpec((None, tsk, D), lambda b, qi, kv: (b, kv, 0)),
        pl.BlockSpec((D, D), lambda b, qi, kv: (0, 0)),     # Wo resident
        pl.BlockSpec((1, D), lambda b, qi, kv: (0, 0)),     # bo resident
    ]
    args = [q, k, v, wo, bo.reshape(1, D).astype(jnp.float32)]
    mask_rows = 0
    if has_mask:
        mask = mask.astype(jnp.int32)
        mask_rows = mask.shape[1]
        if mask_rows == 1:
            in_specs.append(pl.BlockSpec((None, 1, tsk),
                                         lambda b, qi, kv: (b, 0, kv)))
        else:
            assert mask_rows == Sq, "mask must be (B, 1, Sk) or (B, Sq, Sk)"
            in_specs.append(pl.BlockSpec((None, tq, tsk),
                                         lambda b, qi, kv: (b, qi, kv)))
        args.append(mask)

    kern = functools.partial(_flash_mha_kernel, h=h, has_mask=has_mask)
    q_blocks = Sq // tq
    cost = pl.CostEstimate(
        flops=4 * B * Sq * Sk * D + 2 * B * Sq * D * D,   # QK^T + PV + out-proj
        transcendentals=B * h * Sq * Sk,                  # exp
        bytes_accessed=(q.dtype.itemsize * B * Sq * D
                        + 2 * k.dtype.itemsize * B * Sk * D * q_blocks
                        + wo.dtype.itemsize * D * D
                        + 4 * B * mask_rows * Sk
                        + jnp.dtype(out_dtype).itemsize * B * Sq * D))
    return pl.pallas_call(
        kern,
        out_shape=jax.ShapeDtypeStruct((B, Sq, D), out_dtype),
        grid_spec=pltpu.PrefetchScalarGridSpec(
            num_scalar_prefetch=0,
            grid=(B, Sq // tq, Sk // tsk),
            in_specs=in_specs,
            out_specs=pl.BlockSpec((None, tq, D), lambda b, qi, kv: (b, qi, 0)),
            scratch_shapes=[pltpu.VMEM((tq, h), jnp.float32),   # running max
                            pltpu.VMEM((tq, h), jnp.float32),   # running denom
                            pltpu.VMEM((tq, D), jnp.float32)]), # PV accumulator
        compiler_params=pltpu.CompilerParams(
            dimension_semantics=("parallel", "parallel", "arbitrary")),
        cost_estimate=cost,
    )(*args)


# ---------------------------------------------------------------------------
# Parameter handling + module wrapper (glue in plain JAX; no HBM transposes)
# ---------------------------------------------------------------------------

def init_params(key, d_model):
    """4 Linear(d_model, d_model) layers, PyTorch-style uniform init (f32)."""
    keys = jax.random.split(key, 8)
    bound = 1.0 / math.sqrt(d_model)
    params = []
    for i in range(4):
        w = jax.random.uniform(keys[2 * i], (d_model, d_model),
                               jnp.float32, -bound, bound)
        b = jax.random.uniform(keys[2 * i + 1], (d_model,),
                               jnp.float32, -bound, bound)
        params.append((w, b))
    return params


def prepare_params(params, h, compute_dtype=jnp.bfloat16):
    """One-time preprocessing hoisted off the per-call path:
       * folds 1/sqrt(d_k) into Wq / bq,
       * pre-concatenates the QKV weight/bias for the fused self-attn path,
       * casts weights to the compute dtype; biases stay f32 (pre-reshaped).
    """
    (Wq, bq), (Wk, bk), (Wv, bv), (Wo, bo) = params
    d_model = Wq.shape[0]
    assert d_model % h == 0
    scale = 1.0 / math.sqrt(d_model // h)
    Wq = Wq * scale
    bq = bq * scale
    cd = jnp.dtype(compute_dtype)
    f32 = jnp.float32
    return dict(
        h=h, d_model=d_model, compute_dtype=cd,
        wq=Wq.astype(cd), bq=bq.reshape(1, -1).astype(f32),
        wk=Wk.astype(cd), bk=bk.reshape(1, -1).astype(f32),
        wv=Wv.astype(cd), bv=bv.reshape(1, -1).astype(f32),
        w_qkv=jnp.concatenate([Wq, Wk, Wv], axis=1).astype(cd),
        b_qkv=jnp.concatenate([bq, bk, bv], axis=0).reshape(1, -1).astype(f32),
        wo=Wo.astype(cd), bo=bo.reshape(1, -1).astype(f32),
    )


def multi_headed_attention(prepared, query, key, value, mask=None,
                           *, self_attention=None):
    """Forward pass of MultiHeadedAttention (eval mode)."""
    h = prepared["h"]
    B, Sq, D = query.shape
    Sk = key.shape[1]
    assert D == prepared["d_model"]
    if self_attention is None:
        # Under jit, pass self_attention=True explicitly: object identity of
        # traced args may silently pick the slower cross-attention path.
        self_attention = (query is key) and (query is value)

    itemsize = prepared["compute_dtype"].itemsize
    if self_attention and 3 * D * D * itemsize <= _RESIDENT_W_BYTES:
        # Self-attention: x is read from HBM once against the resident (D, 3D)
        # QKV weight.
        q2, k2, v2 = fused_qkv_projection(query.reshape(B * Sq, D),
                                          prepared["w_qkv"], prepared["b_qkv"])
        kp = k2.reshape(B, Sq, D)
        vp = v2.reshape(B, Sq, D)
    else:
        # Cross-attention (or huge d_model): three weight-resident linears.
        q2 = linear(query.reshape(B * Sq, D), prepared["wq"], prepared["bq"])
        k2 = linear(key.reshape(B * Sk, D), prepared["wk"], prepared["bk"])
        v2 = linear(value.reshape(B * Sk, D), prepared["wv"], prepared["bv"])
        kp = k2.reshape(B, Sk, D)
        vp = v2.reshape(B, Sk, D)
    qp = q2.reshape(B, Sq, D)

    # Flash attention with the output projection fused into its epilogue.
    return flash_mha_with_out_proj(qp, kp, vp, mask,
                                   prepared["wo"], prepared["bo"],
                                   h=h, out_dtype=query.dtype)


# Pure-JAX reference for validation -----------------------------------------

def reference(params, query, key, value, mask, *, h):
    B, Sq, D = query.shape
    Sk = key.shape[1]
    d_k = D // h
    (Wq, bq), (Wk, bk), (Wv, bv), (Wo, bo) = params

    def proj(x, W, b):
        S = x.shape[1]
        return (x @ W + b).reshape(B, S, h, d_k).transpose(0, 2, 1, 3)

    qh, kh, vh = proj(query, Wq, bq), proj(key, Wk, bk), proj(value, Wv, bv)
    scores = jnp.einsum("bhqd,bhkd->bhqk", qh, kh) / math.sqrt(d_k)
    if mask is not None:
        m = mask.astype(jnp.int32)[:, None, :, :]              # unsqueeze(1)
        scores = jnp.where(m == 0, -1e9, scores)
    p = jax.nn.softmax(scores, axis=-1)
    x = jnp.einsum("bhqk,bhkd->bhqd", p, vh)
    x = x.transpose(0, 2, 1, 3).reshape(B, Sq, D)
    return x @ Wo + bo


if __name__ == "__main__":
    B, S, d_model, h = 2, 8, 32, 4

    root = jax.random.PRNGKey(0)
    k_par, k_q, k_k, k_v = jax.random.split(root, 4)
    params = init_params(k_par, d_model)

    query = jax.random.normal(k_q, (B, S, d_model), jnp.float32)
    key = jax.random.normal(k_k, (B, S, d_model), jnp.float32)
    value = jax.random.normal(k_v, (B, S, d_model), jnp.float32)

    # src-style mask (B, 1, S): batch 0 sees everything, batch 1 masks the
    # last two key positions.
    mask = jnp.ones((B, 1, S), jnp.int32)
    mask = mask.at[1, 0, -2:].set(0)

    ref_cross = reference(params, query, key, value, mask, h=h)
    ref_self = reference(params, query, query, query, None, h=h)

    # 1) f32 compute path (tight tolerance; only the approx reciprocal in the
    #    softmax differs from the exact reference).
    prep_f32 = prepare_params(params, h, compute_dtype=jnp.float32)
    out = jax.block_until_ready(
        multi_headed_attention(prep_f32, query, key, value, mask))
    np.testing.assert_allclose(np.asarray(out), np.asarray(ref_cross),
                               rtol=5e-3, atol=5e-3)
    out_sa = jax.block_until_ready(
        multi_headed_attention(prep_f32, query, query, query, None,
                               self_attention=True))
    np.testing.assert_allclose(np.asarray(out_sa), np.asarray(ref_self),
                               rtol=5e-3, atol=5e-3)

    # 2) bf16 compute path (the fast configuration; softmax stats stay f32,
    #    so only matmul rounding widens the tolerance).
    prep_bf16 = prepare_params(params, h, compute_dtype=jnp.bfloat16)
    out = jax.block_until_ready(
        multi_headed_attention(prep_bf16, query, key, value, mask))
    np.testing.assert_allclose(np.asarray(out), np.asarray(ref_cross),
                               rtol=5e-2, atol=5e-2)
    out_sa = jax.block_until_ready(
        multi_headed_attention(prep_bf16, query, query, query, None,
                               self_attention=True))
    np.testing.assert_allclose(np.asarray(out_sa), np.asarray(ref_self),
                               rtol=5e-2, atol=5e-2)

    print("KERNEL_OK")
</pallas_src>

<mosaic_0001>
module attributes {stable_mosaic.version = 11 : i64} {
  func.func @_linear_kernel(%arg0: i32, %arg1: memref<16x32xf32, #tpu.memory_space<vmem>>, %arg2: memref<32x32xf32, #tpu.memory_space<vmem>>, %arg3: memref<1x32xf32, #tpu.memory_space<vmem>>, %arg4: memref<16x32xf32, #tpu.memory_space<vmem>>) attributes {dimension_semantics = [#tpu.dimension_semantics<parallel>], iteration_bounds = array<i64: 1>, scalar_prefetch = 0 : i64, scratch_operands = 0 : i64, tpu.core_type = #tpu.core_type<tc>, window_params = [{transform_indices = @transform_0, window_bounds = array<i64: 16, 32>}, {pipeline_mode = #tpu.pipeline_mode<synchronous>, transform_indices = @transform_1, window_bounds = array<i64: 32, 32>}, {pipeline_mode = #tpu.pipeline_mode<synchronous>, transform_indices = @transform_2, window_bounds = array<i64: 1, 32>}, {transform_indices = @transform_3, window_bounds = array<i64: 16, 32>}]} {
    %c0 = arith.constant 0 : index
    %c0_0 = arith.constant 0 : index
    %0 = vector.load %arg1[%c0, %c0_0] : memref<16x32xf32, #tpu.memory_space<vmem>>, vector<16x32xf32>
    %c0_1 = arith.constant 0 : index
    %c0_2 = arith.constant 0 : index
    %1 = vector.load %arg2[%c0_1, %c0_2] : memref<32x32xf32, #tpu.memory_space<vmem>>, vector<32x32xf32>
    %cst = arith.constant dense<0.000000e+00> : vector<16x32xf32>
    %2 = tpu.matmul %0, %1, %cst {dimension_numbers = #tpu.dot_dimension_numbers<[1], [0], [0], [1], [0, 0, 1, 1], [], []>} : vector<16x32xf32>, vector<32x32xf32>, vector<16x32xf32> -> vector<16x32xf32>
    %c0_3 = arith.constant 0 : index
    %c0_4 = arith.constant 0 : index
    %3 = vector.load %arg3[%c0_3, %c0_4] : memref<1x32xf32, #tpu.memory_space<vmem>>, vector<1x32xf32>
    %4 = vector.broadcast %3 : vector<1x32xf32> to vector<16x32xf32>
    %5 = arith.addf %2, %4 : vector<16x32xf32>
    %c0_5 = arith.constant 0 : index
    %c0_6 = arith.constant 0 : index
    %6 = vector.load %arg4[%c0_5, %c0_6] : memref<16x32xf32, #tpu.memory_space<vmem>>, vector<16x32xf32>
    tpu.vector_store %arg4[%c0_5, %c0_6], %5 {strides = array<i32>} : memref<16x32xf32, #tpu.memory_space<vmem>>, vector<16x32xf32>,
    return
  }
  func.func @transform_0(%arg0: i32) -> (i32, i32) {
    %c0_i32 = arith.constant 0 : i32
    %c0_i32_0 = arith.constant 0 : i32
    return %arg0, %c0_i32 : i32, i32
  }
  func.func @transform_1(%arg0: i32) -> (i32, i32) {
    %c0_i32 = arith.constant 0 : i32
    %c0_i32_0 = arith.constant 0 : i32
    %c0_i32_1 = arith.constant 0 : i32
    return %c0_i32, %c0_i32_0 : i32, i32
  }
  func.func @transform_2(%arg0: i32) -> (i32, i32) {
    %c0_i32 = arith.constant 0 : i32
    %c0_i32_0 = arith.constant 0 : i32
    %c0_i32_1 = arith.constant 0 : i32
    return %c0_i32, %c0_i32_0 : i32, i32
  }
  func.func @transform_3(%arg0: i32) -> (i32, i32) {
    %c0_i32 = arith.constant 0 : i32
    %c0_i32_0 = arith.constant 0 : i32
    return %arg0, %c0_i32 : i32, i32
  }
}

</mosaic_0001>

<bundles_post_ra>
// kernel: tpu_custom_call.1
= control target key start
LH: loop header
LB: loop body
LE: loop exit
PB: predicated region body
PF: predicated region fallthrough
CT: control target
= control target key end

     0   :  { %8 = vsyncpa [#allocation3], 0  ;;  %s299_s0 = inlined_call_operand.hbm [shape: f32[16,32], index: 0, kind: input, shape index: {}]   ;;  %s300_s1 = inlined_call_operand.hbm [shape: f32[32,32], index: 1, kind: input, shape index: {}]   ;;  %s301_s2 = inlined_call_operand.vmem [shape: f32[1,32], index: 2, kind: input, shape index: {}]   ;;  %s302_s3 = inlined_call_operand.hbm [shape: f32[16,32], index: 3, kind: output, shape index: {}]  }
   0x1   :  { %9 = vsyncpa [#allocation6], 0 }
   0x2   :  { %10 = vsyncpa [#allocation4], 0  ;;  %s249_s12 = smov [#allocation2]  }
   0x3   :  { %s16_s13 = sshll.u32 %s249_s12, 4  ;;  %s17_s13 = int_to_ptr.vmem [resolvable:$true] %s16_s13 }
   0x4   :  { %s191_s14 = scalar_lea.vmem %s17_s13, 256  ;;  %p196_p1 = scmp.lt.s32.totalorder %s17_s13, %s17_s13 }
   0x5   :  { %p192_p0 = scmp.ne.s32.totalorder %s17_s13, %s191_s14  ;;  %p197_p2 = scmp.lt.s32.totalorder %s191_s14, %s191_s14 }
   0x7   :  { %p198_p3 = por %p197_p2, %p196_p1 }
   0x9   :  { %p199_p4 = pnand %p198_p3, %p192_p0 }
   0xb   :  { %202 = shalt.err (!%p199_p4)
}
   0xc   :  { %s250_s15 = smov 128   ;;  %s251_s16 = smov 8  }
   0xd   :  { %22 = dma.hbm_to_vmem [thread:$0]  %s299_s0, 256, %s17_s13, [#allocation3], %s250_s15, %s250_s15, %s251_s16  }
   0xe   :  { %s252_s19 = smov [#allocation5]  }
   0xf   :  { %s28_s20 = sshll.u32 %s252_s19, 4  ;;  %s29_s20 = int_to_ptr.vmem [resolvable:$true] %s28_s20 }
  0x10   :  { %s211_s21 = scalar_lea.vmem %s29_s20, 512  ;;  %p216_p6 = scmp.lt.s32.totalorder %s29_s20, %s29_s20 }
  0x11   :  { %p212_p5 = scmp.ne.s32.totalorder %s29_s20, %s211_s21  ;;  %p217_p7 = scmp.lt.s32.totalorder %s211_s21, %s211_s21 }
  0x13   :  { %p218_p8 = por %p217_p7, %p216_p6 }
  0x15   :  { %p219_p9 = pnand %p218_p8, %p212_p5 }
  0x17   :  { %222 = shalt.err (!%p219_p9)
}
  0x18   :  { %34 = dma.hbm_to_vmem [thread:$0]  %s300_s1, 512, %s29_s20, [#allocation6], %s250_s15, %s250_s15, %s251_s16  }
  0x19   :  { %243 = dma.done.wait [#allocation3], 256  }
  0x1a   :  { %244 = vsyncadd [#allocation3], 4294967040 }
  0x1b   :  { %245 = dma.done.wait [#allocation6], 512  }
  0x1c   :  { %246 = vsyncadd [#allocation6], 4294966784  ;;  %vm56_vm0 = vcmask 261120   ;;  %v48_v0 = vld [vmem:[#allocation5 + $0x18] sm:$0xff]  ;;  %v47_v1 = vld [vmem:[#allocation5 + $0x10] sm:$0xff]  ;;  %s253_s24 = smov [#allocation7]  }
  0x1d   :  { %167 = vmatprep.subr.mxu0 %v48_v0  ;;  %v43_v2 = vld [vmem:[#allocation2] sm:$0xff]  ;;  %v46_v3 = vld [vmem:[#allocation5 + $0x8] sm:$0xff]  ;;  %v45_v4 = vld [vmem:[#allocation5] sm:$0xff]  ;;  %s145_s25 = sshll.u32 %s253_s24, 4  ;;  %s146_s25 = int_to_ptr.vmem [resolvable:$true] %s145_s25 }
  0x1e   :  { %168 = vmatpush3.msra.mxu0 %v48_v0  ;;  %175 = vmatprep.mubr.msk.f32.mxu0 %vm56_vm0, %v43_v2  ;;  %v44_v5 = vld [vmem:[#allocation2 + $0x8] sm:$0xff]  ;;  %v158_v6 = vld [vmem:[%s301_s2] ss:$0 sm:$0xff]  ;;  %s223_s26 = scalar_lea.vmem %s146_s25, 256  ;;  %p228_p11 = scmp.lt.s32.totalorder %s146_s25, %s146_s25 }
  0x1f   :  { %169 = vmatprep.subr.mxu0 %v47_v1  ;;  %p224_p10 = scmp.ne.s32.totalorder %s146_s25, %s223_s26  ;;  %p229_p12 = scmp.lt.s32.totalorder %s223_s26, %s223_s26 }
  0x20   :  { %170 = vmatpush3.msra.mxu0 %v47_v1 }
  0x21   :  { %171 = vmatprep.subr.mxu0 %v46_v3  ;;  %p230_p13 = por %p229_p12, %p228_p11 }
  0x22   :  { %172 = vmatpush3.msra.mxu0 %v46_v3 }
  0x23   :  { %173 = vmatprep.subr.mxu0 %v45_v4  ;;  %p231_p0 = pnand %p230_p13, %p224_p10 }
  0x24   :  { %174 = vmatpush3.msra.mxu0 %v45_v4 }
  0x25   :  { %176 = vmatmul.mubr.msk.f32.vlgmr.msra.gmra.mxu0 %vm56_vm0, %v44_v5 }
  0xe5   :  { %v177_v7 = vpop.f32.mrf.mxu0 }
  0xe6   :  { %v135_v8 = vadd.f32 %v177_v7, %v158_v6 }
  0xe7   :  { %v129_v9 = vpop.f32.mrf.mxu0 }
  0xe8   :  { %139 = vst.msk [vmem:[#allocation7 + $0x8] sm:$0xff] %vm56_vm0, %v135_v8  ;;  %v130_v10 = vadd.f32 %v158_v6, %v129_v9 }
  0xea   :  { %138 = vst.msk [vmem:[#allocation7] sm:$0xff] %vm56_vm0, %v130_v10 }
  0xeb   :  { %234 = shalt.err (!%p231_p0)
}
  0xec   :  { %151 = dma.vmem_to_hbm [thread:$0]  %s146_s25, 256, %s302_s3, [#allocation4], %s250_s15, %s250_s15, %s251_s16  }
  0xed   :  { %247 = dma.done.wait [#allocation4], 256  }
  0xee   :  { %248 = vsyncadd [#allocation4], 4294967040 }
  0xef   :  { %155 = vsyncpa [#allocation3], 1 }
  0xf0   :  { %156 = vsyncpa [#allocation6], 1 }
  0xf1   :  { %157 = vsyncpa [#allocation4], 1 }

</bundles_post_ra>
